<compile_context>
chip_gen: v6e
topology: v6e:2x2x1
jax: 0.10.0
libtpu: 0.0.40
codegen_flags: <defaults>
</compile_context>

<pallas_src>
import functools

import jax
import jax.numpy as jnp
from jax import lax
from jax.experimental import pallas as pl
from jax.experimental.pallas import tpu as pltpu

_NUM_CORES = 2  # leading "parallel" grid axis: uses both TCs on v7x, cheap no-op elsewhere


def _ce_loss_kernel(feat_ref, w_ref, bias_ref, lab_ref, out_ref, loss_acc, *, mask_rows):
    i = pl.program_id(1)

    @pl.when(i == 0)
    def _init():
        loss_acc[...] = jnp.zeros_like(loss_acc)

    feats = feat_ref[...]                      # (tm, D) native dtype
    w = w_ref[...]                             # (D, L_pad) native dtype, lane-dense in L

    # logits = features @ W^T; weight was transposed once in the wrapper so the MXU
    # consumes a canonical (M,K)x(K,N) contraction with no per-step transpose.
    logits = jnp.dot(feats, w, preferred_element_type=jnp.float32)   # (tm, L_pad) f32

    # Padded label columns get a -1e30 bias.  The FINITE sentinel is load-bearing:
    # with -inf, a label landing in a padded column or exp/select interactions would
    # produce NaN.  Do not "clean this up" to -inf.
    logits = logits + bias_ref[...]

    tm, l_pad = logits.shape
    labels = lab_ref[...]                      # (tm, 1) int32, -1 marks padded rows
    col = lax.broadcasted_iota(jnp.int32, (tm, l_pad), 1)

    # Numerically stable cross-entropy, one pass over the (tm, L_pad) tile:
    #   loss_row = log(sum(exp(logits - max))) - (logits[label] - max)
    row_max = jnp.max(logits, axis=-1, keepdims=True)
    shifted = logits - row_max                 # reused for exp and for picked
    sum_exp = jnp.sum(jnp.exp(shifted), axis=-1, keepdims=True)
    picked = jnp.sum(jnp.where(col == labels, shifted, 0.0), axis=-1, keepdims=True)
    per_row = jnp.log(sum_exp) - picked        # (tm, 1)

    if mask_rows:
        # Only emitted when the batch was padded: padded rows carry label -1.
        per_row = jnp.where(labels >= 0, per_row, 0.0)

    loss_acc[...] += jnp.sum(per_row, axis=0, keepdims=True)

    @pl.when(i == pl.num_programs(1) - 1)
    def _finalize():
        # Lane-dense (8,128) output tile per core; wrapper reads element [c*8, 0].
        out_ref[...] = jnp.broadcast_to(loss_acc[...], out_ref.shape)


def softmax_layer_loss(features, weight, labels, *, block_rows=512):
    """features: (B, D), weight: (L, D), labels: (B,) int -> scalar f32 mean CE loss."""
    B, D = features.shape
    L, D2 = weight.shape
    assert D == D2, "feature dim mismatch"

    feat_isz = jnp.dtype(features.dtype).itemsize
    w_isz = jnp.dtype(weight.dtype).itemsize

    # Pad the label dim to a lane-dense multiple of 128 (zero weight rows, masked
    # to -1e30 via the bias row), then transpose ONCE so the kernel sees (D, L_pad).
    l_pad = max(128, ((L + 127) // 128) * 128)
    w_t = weight
    if l_pad != L:
        w_t = jnp.pad(w_t, ((0, l_pad - L), (0, 0)))
    w_t = w_t.T                                                # (D, L_pad)
    mask_bias = jnp.where(jnp.arange(l_pad) < L, 0.0, -1e30).astype(jnp.float32)
    mask_bias = mask_bias.reshape(1, l_pad)

    # --- VMEM budget: big tiles on v5e/v6e (128 MiB VMEM), tighter cap on v7x (64 MiB).
    try:
        vmem_cap = int(pltpu.get_tpu_info().vmem_capacity_bytes)
    except Exception:
        vmem_cap = 64 * 1024 * 1024                            # conservative (v7x) fallback
    vmem_budget = min((vmem_cap * 3) // 4, 100 * 1024 * 1024)  # ~48 MiB on v7x, ~96 MiB else

    w_bytes = l_pad * D * w_isz                                # resident, single-buffered

    def _step_bytes(tm, nbuf):
        return (nbuf * tm * D * feat_isz                       # pipelined feature buffers
                + w_bytes                                      # resident weight block
                + 6 * tm * l_pad * 4                           # f32 temps (logits/shifted/...)
                + nbuf * tm * 4                                # label buffers
                + (1 << 16))                                   # bias / out / scratch / slack

    tm = min(block_rows, ((B + 7) // 8) * 8)
    tm = max(8, (tm // 8) * 8)
    while tm > 8 and _step_bytes(tm, 2) > vmem_budget:
        tm = max(8, ((tm // 2) // 8) * 8)
    feat_bufs = 3 if _step_bytes(tm, 3) <= vmem_budget else 2

    num_tiles_total = (B + tm - 1) // tm
    tiles_per_core = (num_tiles_total + _NUM_CORES - 1) // _NUM_CORES
    b_pad = _NUM_CORES * tiles_per_core * tm
    if b_pad != B:
        features = jnp.pad(features, ((0, b_pad - B), (0, 0)))
    labels2d = jnp.pad(labels.reshape(-1).astype(jnp.int32), (0, b_pad - B),
                       constant_values=-1).reshape(b_pad, 1)
    mask_rows = b_pad != B

    kernel = functools.partial(_ce_loss_kernel, mask_rows=mask_rows)
    out_shape = jax.ShapeDtypeStruct((_NUM_CORES * 8, 128), jnp.float32)
    row_map = lambda c, i: (c * tiles_per_core + i, 0)

    def _build(use_pipeline_modes):
        def spec(shape, index_map, bufs=None):
            if use_pipeline_modes and bufs is not None:
                return pl.BlockSpec(shape, index_map, pipeline_mode=pl.Buffered(bufs))
            return pl.BlockSpec(shape, index_map)

        grid_spec = pltpu.PrefetchScalarGridSpec(
            num_scalar_prefetch=0,
            grid=(_NUM_CORES, tiles_per_core),
            in_specs=[
                spec((tm, D), row_map, feat_bufs),              # streamed feature tiles
                spec((D, l_pad), lambda c, i: (0, 0), 1),       # resident weight (1 buffer)
                spec((1, l_pad), lambda c, i: (0, 0), 1),       # resident column-mask bias
                pl.BlockSpec((tm, 1), row_map),                 # labels for this tile
            ],
            out_specs=pl.BlockSpec((8, 128), lambda c, i: (c, 0)),
            scratch_shapes=[pltpu.VMEM((1, 1), jnp.float32)],   # per-core running loss sum
        )
        return pl.pallas_call(
            kernel,
            out_shape=out_shape,
            grid_spec=grid_spec,
            compiler_params=pltpu.CompilerParams(
                # independent batch halves across cores; accumulator carried over tiles
                dimension_semantics=("parallel", "arbitrary"),
                vmem_limit_bytes=int(vmem_budget),
            ),
        )

    try:
        out = _build(True)(features, w_t, mask_bias, labels2d)
    except Exception:
        # Fallback for JAX builds where per-BlockSpec pipeline_mode isn't supported.
        out = _build(False)(features, w_t, mask_bias, labels2d)

    partials = out[0::8, 0]                    # one partial loss sum per core
    return jnp.sum(partials) / jnp.float32(B)  # mean over the true batch size


if __name__ == "__main__":
    key = jax.random.PRNGKey(0)
    batch = 8          # number of sentences
    hidden = 32        # model.get_sentence_embedding_dimension()
    num_labels = 4

    k_feat, k_w, k_lab = jax.random.split(key, 3)

    # "sentence_embedding" output of the encoder (synthetic stand-in).
    # TODO(synk): the encoder (`self.model`, a SentenceTransformer) is external;
    # its forward is not reproduced here — we start from its embedding output.
    features = jax.random.normal(k_feat, (batch, hidden), dtype=jnp.float32)

    # nn.Linear(hidden, num_labels, bias=False).weight ~ U(-1/sqrt(hidden), 1/sqrt(hidden))
    bound = 1.0 / jnp.sqrt(jnp.float32(hidden))
    weight = jax.random.uniform(k_w, (num_labels, hidden),
                                minval=-bound, maxval=bound, dtype=jnp.float32)

    labels = jax.random.randint(k_lab, (batch,), 0, num_labels, dtype=jnp.int32)

    loss = softmax_layer_loss(features, weight, labels)
    loss = jax.block_until_ready(loss)

    # Pure-JAX reference (CrossEntropyLoss, mean reduction).
    logits_ref = features @ weight.T
    picked_ref = jnp.take_along_axis(logits_ref, labels[:, None], axis=1)[:, 0]
    loss_ref = jnp.mean(jax.nn.logsumexp(logits_ref, axis=-1) - picked_ref)
    assert jnp.allclose(loss, loss_ref, rtol=1e-3, atol=1e-3), (loss, loss_ref)

    print(loss)  # mirrors the `print(loss)` in the PyTorch forward
    print("KERNEL_OK")
</pallas_src>

<mosaic_0001>
module attributes {stable_mosaic.version = 11 : i64} {
  func.func @_ce_loss_kernel(%arg0: i32, %arg1: i32, %arg2: memref<8x32xf32, #tpu.memory_space<vmem>>, %arg3: memref<32x128xf32, #tpu.memory_space<vmem>>, %arg4: memref<1x128xf32, #tpu.memory_space<vmem>>, %arg5: memref<8x1xi32, #tpu.memory_space<vmem>>, %arg6: memref<8x128xf32, #tpu.memory_space<vmem>>, %arg7: memref<1x1xf32, #tpu.memory_space<vmem>>) attributes {dimension_semantics = [#tpu.dimension_semantics<parallel>, #tpu.dimension_semantics<arbitrary>], iteration_bounds = array<i64: 2, 1>, scalar_prefetch = 0 : i64, scratch_operands = 1 : i64, tpu.core_type = #tpu.core_type<tc>, window_params = [{transform_indices = @transform_0, window_bounds = array<i64: 8, 32>}, {pipeline_mode = #tpu.pipeline_mode<synchronous>, transform_indices = @transform_1, window_bounds = array<i64: 32, 128>}, {pipeline_mode = #tpu.pipeline_mode<synchronous>, transform_indices = @transform_2, window_bounds = array<i64: 1, 128>}, {transform_indices = @transform_3, window_bounds = array<i64: 8, 1>}, {transform_indices = @transform_4, window_bounds = array<i64: 8, 128>}]} {
    %c0_i32 = arith.constant 0 : i32
    %0 = arith.cmpi eq, %arg1, %c0_i32 : i32
    %1 = arith.extui %0 : i1 to i32
    %c0_i32_0 = arith.constant 0 : i32
    %2 = arith.cmpi ne, %1, %c0_i32_0 : i32
    scf.if %2 {
      %cst_21 = arith.constant 0.000000e+00 : f32
      %38 = vector.broadcast %cst_21 : f32 to vector<1x1xf32>
      %c0_22 = arith.constant 0 : index
      %c0_23 = arith.constant 0 : index
      %39 = vector.load %arg7[%c0_22, %c0_23] : memref<1x1xf32, #tpu.memory_space<vmem>>, vector<1x1xf32>
      tpu.vector_store %arg7[%c0_22, %c0_23], %38 {strides = array<i32>} : memref<1x1xf32, #tpu.memory_space<vmem>>, vector<1x1xf32>,
    } else {
    }
    %c0 = arith.constant 0 : index
    %c0_1 = arith.constant 0 : index
    %3 = vector.load %arg2[%c0, %c0_1] : memref<8x32xf32, #tpu.memory_space<vmem>>, vector<8x32xf32>
    %c0_2 = arith.constant 0 : index
    %c0_3 = arith.constant 0 : index
    %4 = vector.load %arg3[%c0_2, %c0_3] : memref<32x128xf32, #tpu.memory_space<vmem>>, vector<32x128xf32>
    %cst = arith.constant dense<0.000000e+00> : vector<8x128xf32>
    %5 = tpu.matmul %3, %4, %cst {dimension_numbers = #tpu.dot_dimension_numbers<[1], [0], [0], [1], [0, 0, 1, 1], [], []>} : vector<8x32xf32>, vector<32x128xf32>, vector<8x128xf32> -> vector<8x128xf32>
    %c0_4 = arith.constant 0 : index
    %c0_5 = arith.constant 0 : index
    %6 = vector.load %arg4[%c0_4, %c0_5] : memref<1x128xf32, #tpu.memory_space<vmem>>, vector<1x128xf32>
    %7 = vector.broadcast %6 : vector<1x128xf32> to vector<8x128xf32>
    %8 = arith.addf %5, %7 : vector<8x128xf32>
    %c0_6 = arith.constant 0 : index
    %c0_7 = arith.constant 0 : index
    %9 = vector.load %arg5[%c0_6, %c0_7] : memref<8x1xi32, #tpu.memory_space<vmem>>, vector<8x1xi32>
    %10 = tpu.iota {dimensions = array<i32: 1>} : vector<8x128xi32>
    %cst_8 = arith.constant dense<0xFF800000> : vector<8xf32>
    %11 = vector.multi_reduction <maximumf>, %8, %cst_8 [1] : vector<8x128xf32> to vector<8xf32>
    %12 = vector.shape_cast %11 : vector<8xf32> to vector<8x1xf32>
    %13 = vector.broadcast %12 : vector<8x1xf32> to vector<8x128xf32>
    %14 = arith.subf %8, %13 : vector<8x128xf32>
    %15 = math.exp %14 : vector<8x128xf32>
    %cst_9 = arith.constant dense<0.000000e+00> : vector<8xf32>
    %16 = vector.multi_reduction <add>, %15, %cst_9 [1] : vector<8x128xf32> to vector<8xf32>
    %17 = vector.shape_cast %16 : vector<8xf32> to vector<8x1xf32>
    %18 = vector.broadcast %9 : vector<8x1xi32> to vector<8x128xi32>
    %19 = arith.cmpi eq, %10, %18 : vector<8x128xi32>
    %cst_10 = arith.constant 0.000000e+00 : f32
    %20 = vector.broadcast %cst_10 : f32 to vector<8x128xf32>
    %21 = arith.select %19, %14, %20 : vector<8x128xi1>, vector<8x128xf32>
    %cst_11 = arith.constant dense<0.000000e+00> : vector<8xf32>
    %22 = vector.multi_reduction <add>, %21, %cst_11 [1] : vector<8x128xf32> to vector<8xf32>
    %23 = vector.shape_cast %22 : vector<8xf32> to vector<8x1xf32>
    %24 = math.log %17 : vector<8x1xf32>
    %25 = arith.subf %24, %23 : vector<8x1xf32>
    %c0_i32_12 = arith.constant 0 : i32
    %26 = vector.broadcast %c0_i32_12 : i32 to vector<8x1xi32>
    %27 = arith.cmpi sge, %9, %26 : vector<8x1xi32>
    %cst_13 = arith.constant 0.000000e+00 : f32
    %28 = vector.broadcast %cst_13 : f32 to vector<8x1xf32>
    %29 = arith.select %27, %25, %28 : vector<8x1xi1>, vector<8x1xf32>
    %c0_14 = arith.constant 0 : index
    %c0_15 = arith.constant 0 : index
    %30 = vector.load %arg7[%c0_14, %c0_15] : memref<1x1xf32, #tpu.memory_space<vmem>>, vector<1x1xf32>
    %cst_16 = arith.constant dense<0.000000e+00> : vector<1xf32>
    %31 = vector.multi_reduction <add>, %29, %cst_16 [0] : vector<8x1xf32> to vector<1xf32>
    %32 = vector.shape_cast %31 : vector<1xf32> to vector<1x1xf32>
    %33 = arith.addf %30, %32 : vector<1x1xf32>
    %c0_17 = arith.constant 0 : index
    %c0_18 = arith.constant 0 : index
    %34 = vector.load %arg7[%c0_17, %c0_18] : memref<1x1xf32, #tpu.memory_space<vmem>>, vector<1x1xf32>
    tpu.vector_store %arg7[%c0_17, %c0_18], %33 {strides = array<i32>} : memref<1x1xf32, #tpu.memory_space<vmem>>, vector<1x1xf32>,
    %c0_i32_19 = arith.constant 0 : i32
    %35 = arith.cmpi eq, %arg1, %c0_i32_19 : i32
    %36 = arith.extui %35 : i1 to i32
    %c0_i32_20 = arith.constant 0 : i32
    %37 = arith.cmpi ne, %36, %c0_i32_20 : i32
    scf.if %37 {
      %c0_21 = arith.constant 0 : index
      %c0_22 = arith.constant 0 : index
      %38 = vector.load %arg7[%c0_21, %c0_22] : memref<1x1xf32, #tpu.memory_space<vmem>>, vector<1x1xf32>
      %39 = vector.shape_cast %38 : vector<1x1xf32> to vector<1x1xf32>
      %40 = vector.broadcast %39 : vector<1x1xf32> to vector<8x128xf32>
      %c0_23 = arith.constant 0 : index
      %c0_24 = arith.constant 0 : index
      %41 = vector.load %arg6[%c0_23, %c0_24] : memref<8x128xf32, #tpu.memory_space<vmem>>, vector<8x128xf32>
      tpu.vector_store %arg6[%c0_23, %c0_24], %40 {strides = array<i32>} : memref<8x128xf32, #tpu.memory_space<vmem>>, vector<8x128xf32>,
    } else {
    }
    return
  }
  func.func @transform_0(%arg0: i32, %arg1: i32) -> (i32, i32) {
    %c1_i32 = arith.constant 1 : i32
    %0 = arith.muli %arg0, %c1_i32 : i32
    %1 = arith.addi %0, %arg1 : i32
    %c0_i32 = arith.constant 0 : i32
    %c0_i32_0 = arith.constant 0 : i32
    return %1, %c0_i32 : i32, i32
  }
  func.func @transform_1(%arg0: i32, %arg1: i32) -> (i32, i32) {
    %c0_i32 = arith.constant 0 : i32
    %c0_i32_0 = arith.constant 0 : i32
    %c0_i32_1 = arith.constant 0 : i32
    return %c0_i32, %c0_i32_0 : i32, i32
  }
  func.func @transform_2(%arg0: i32, %arg1: i32) -> (i32, i32) {
    %c0_i32 = arith.constant 0 : i32
    %c0_i32_0 = arith.constant 0 : i32
    %c0_i32_1 = arith.constant 0 : i32
    return %c0_i32, %c0_i32_0 : i32, i32
  }
  func.func @transform_3(%arg0: i32, %arg1: i32) -> (i32, i32) {
    %c1_i32 = arith.constant 1 : i32
    %0 = arith.muli %arg0, %c1_i32 : i32
    %1 = arith.addi %0, %arg1 : i32
    %c0_i32 = arith.constant 0 : i32
    %c0_i32_0 = arith.constant 0 : i32
    return %1, %c0_i32 : i32, i32
  }
  func.func @transform_4(%arg0: i32, %arg1: i32) -> (i32, i32) {
    %c0_i32 = arith.constant 0 : i32
    %c0_i32_0 = arith.constant 0 : i32
    return %arg0, %c0_i32 : i32, i32
  }
}

</mosaic_0001>

<bundles_post_ra>
// kernel: tpu_custom_call.1
= control target key start
LH: loop header
LB: loop body
LE: loop exit
PB: predicated region body
PF: predicated region fallthrough
CT: control target
= control target key end

     0   :  { %9 = vsyncpa [#allocation4], 0  ;;  %s880_s0 = inlined_call_operand.vmem [shape: f32[16,32], index: 0, kind: input, shape index: {}]   ;;  %s881_s1 = inlined_call_operand.hbm [shape: f32[32,128], index: 1, kind: input, shape index: {}]   ;;  %s882_s2 = inlined_call_operand.vmem [shape: f32[1,128], index: 2, kind: input, shape index: {}]   ;;  %s883_s3 = inlined_call_operand.vmem [shape: s32[16,1], index: 3, kind: input, shape index: {}]   ;;  %s884_s4 = inlined_call_operand.hbm [shape: f32[16,128], index: 4, kind: output, shape index: {}]  }
   0x1   :  { %10 = vsyncpa [#allocation5], 0 }
   0x2   :  { %12 = vsyncpa [#allocation5 + $0x1], 0  ;;  %s746_s15 = smov 0   ;;  %s748_s16 = smov 0  }
   0x3   :  { %s750_s17 = smov 0   ;;  %s752_s18 = smov 0  }
   0x4   :  { %s754_s19 = smov 0   ;;  %s756_s20 = smov 0  }
   0x5 LB: > { %s496_s21 = sadd.s32 4294967295, %s712_s20   ;;  %s497_s22 = sadd.s32 4294967294, %s712_s20   ;;  %s712_s20 = sphi %s756_s20, %s18_s20   ;;  %s708_s19 = sphi %s754_s19, %s893_s19   ;;  %s704_s18 = sphi %s752_s18, %s892_s18   ;;  %s700_s17 = sphi %s750_s17, %s891_s17   ;;  %s696_s16 = sphi %s748_s16, %s890_s16   ;;  %s692_s15 = sphi %s746_s15, %s889_s15  }
   0x6   : > { %s30_s23 = sadd.s32 1, %s708_s19  ;;  %s135_s24 = sadd.s32 1, %s700_s17 }
   0x7   : > { %p32_p0 = scmp.ge.s32.totalorder %s30_s23, 2  ;;  %p145_p1 = scmp.ne.s32.totalorder %s700_s17, %s696_s16 }
   0x8   : > { %p146_p2 = scmp.eq.s32.totalorder %s496_s21, 1  ;;  %p151_p3 = scmp.ne.s32.totalorder %s696_s16, %s692_s15 }
   0x9   : > { %s895_s23 = smov (%p32_p0, %s30_s23), 0  ;;  %p152_p5 = scmp.eq.s32.totalorder %s497_s22, 1 }
   0xa   : > { %p786_p4 = por %p146_p2, %p145_p1  ;;  %s132_s26 = ssub.s32 %s708_s19, %s895_s23 }
   0xb   : > { %p498_p6 = scmp.ge.s32.totalorder %s712_s20, 1  ;;  %p133_p7 = scmp.eq.s32.totalorder %s132_s26, 0 }
   0xc   : > { %p793_p8 = por %p152_p5, %p151_p3  ;;  %p159_p9 = scmp.lt.s32.totalorder %s712_s20, 3 }
   0xd   : > { %s799_s28 = scalar_select %p133_p7, %s700_s17, %s135_s24  }
   0xe   : > { %p801_p10 = pnand %p498_p6, %p159_p9  ;;  %p805_p11 = scmp.eq.s32.totalorder %s496_s21, 0 }
   0xf   : > { %s714_s5 = smov [#allocation3]  }
  0x10   : > { %p535_p12 = pneg %p801_p10  ;;  %s171_s6 = sshll.u32 %s714_s5, 4  ;;  %s172_s6 = int_to_ptr.vmem [resolvable:$true] %s171_s6 }
  0x11   : > { %s617_s7 = scalar_lea.vmem %s172_s6, 512  ;;  %p625_p5 = scmp.lt.s32.totalorder %s172_s6, %s172_s6 }
  0x12   : > { %p536_p13 = pnand %p805_p11, %p535_p12  ;;  %p618_p1 = scmp.ne.s32.totalorder %s172_s6, %s617_s7 }
  0x13   : > { %p626_p6 = scmp.lt.s32.totalorder %s617_s7, %s617_s7 }
  0x14   : > { %p608_p0 = pneg %p536_p13 }
  0x15   : > { %p627_p7 = por %p626_p6, %p625_p5 }
  0x16   : > { %p620_p2 = pnand %p618_p1, %p608_p0 }
  0x18   : > { %p621_p3 = pneg %p620_p2 }
  0x1a   : > { %p628_p9 = pnand %p627_p7, %p621_p3 }
  0x1c   : > { %631 = shalt.err (!%p628_p9)
}
  0x1d   : > { %s715_s8 = smov 128   ;;  %s716_s9 = smov 8  }
  0x1e   : > { %538 = dma.hbm_to_vmem [thread:$0]  (!%p536_p13), %s881_s1, 512, %s172_s6, [#allocation4], %s715_s8, %s715_s8, %s716_s9  }
  0x1f   : > { %208 = sbr.rel (%p801_p10) target bundleno = 714 (0x2ca), region = 36 }
  0x24   : > { %683 = dma.done.wait (%p805_p11), [#allocation4], 512  }
  0x25   : > { %685 = vsyncadd (%p805_p11), [#allocation4], 4294966784  ;;  %vm255_vm0 = vcmask 0   ;;  %p240_p12 = scmp.lt.s32.totalorder %s704_s18, 1  ;;  %v717_v0 = vmov 0.0   ;;  %vm718_vm1 = vmmov 0   ;;  %v344_v15 = vlaneseq }
  0x26   : > { %256 = vst.msk [vmem:[#allocation2] sm:$0x1] %vm255_vm0, %v717_v0  ;;  %518 = vmatprep.subr.mxu0 %v717_v0  ;;  %526 = vmatprep.mubr.msk.f32.mxu0 %vm718_vm1, %v717_v0  ;;  %v261_v1 = vld [vmem:[#allocation3 + $0x18] sm:$0xff]  ;;  %v260_v2 = vld [vmem:[#allocation3 + $0x10] sm:$0xff]  ;;  %v259_v3 = vld [vmem:[#allocation3 + $0x8] sm:$0xff]  ;;  %vm269_vm2 = vcmask 261120  }
  0x27   : > { %s241_s12 = scalar_select %p240_p12, %s704_s18, 1  ;;  %519 = vmatpush3.msra.mxu0 %v261_v1  ;;  %v258_v4 = vld [vmem:[#allocation3] sm:$0xff]  ;;  %v719_v6 = vmov 0   ;;  %v506_v7 = vld [vmem:[%s882_s2] ss:$0 sm:$0xff]  ;;  %v345_v16 = vand.u32 127, %v344_v15 }
  0x28   : > { %520 = vmatprep.subr.mxu0 %v717_v0  ;;  %600 = vset.pattern.permute.xlu0 %v719_v6  ;;  %vm366_vm5 = vcmask 7168   ;;  %s236_s6 = sand.u32 1, %s696_s16   ;;  %s510_s10 = sshll.u32 %s704_s18, 7 }
  0x29   : > { %s504_s13 = sshll.u32 %s241_s12, 3  ;;  %521 = vmatpush3.msra.mxu0 %v260_v2  ;;  %601 = vset.pattern.permute.xlu1 %v719_v6  ;;  %s503_s7 = sshll.u32 %s236_s6, 3 }
  0x2a   : > { %s243_s22 = scalar_lea.vmem %s880_s0, %s504_s13  ;;  %522 = vmatprep.subr.mxu0 %v717_v0  ;;  %s249_s5 = scalar_lea.vmem %s883_s3, %s504_s13 }
  0x2b   : > { %523 = vmatpush3.msra.mxu0 %v259_v3  ;;  %v257_v5 = vld [vmem:[%s243_s22] sm:$0xff]  ;;  %s238_s8 = scalar_lea.vmem [#allocation6], %s503_s7  ;;  %s403_s13 = scalar_lea.hbm %s884_s4, %s510_s10 }
  0x2c   : > { %524 = vmatprep.subr.mxu0 %v717_v0  ;;  %v343_v11 = vld [vmem:[%s249_s5] sm:$0xff]  ;;  %s405_s9 = sshll.u32 %s238_s8, 4  ;;  %s392_s14 = scalar_lea.sflag [#allocation5], %s236_s6  ;;  %s837_s9 = int_to_ptr.vmem [resolvable:$true] %s405_s9 }
  0x2d   : > { %525 = vmatpush3.msra.mxu0 %v258_v4  ;;  %vm363_vm4 = vcmp.ge.s32.totalorder %v343_v11, 0  ;;  %v365_v32 = vld [vmem:[#allocation2] sm:$0x1]  ;;  %s632_s21 = scalar_lea.vmem %s837_s9, 128  ;;  %s720_s22 = smov [#allocation6]  }
  0x2e   : > { %527 = vmatmul.mubr.msk.f32.vlgmr.msra.gmra.mxu0 %vm269_vm2, %v257_v5  ;;  %p633_p10 = scmp.ne.s32.totalorder %s837_s9, %s632_s21  ;;  %s636_s24 = sshll.u32 %s720_s22, 4  ;;  %s637_s24 = int_to_ptr.vmem [resolvable:$false] %s636_s24 }
  0x2f   : > { %s638_s18 = scalar_lea.vmem %s637_s24, 256  ;;  %p639_p0 = scmp.lt.s32.totalorder %s837_s9, %s637_s24 }
  0x30   : > { %p634_p11 = pnand %p633_p10, %p786_p4  ;;  %p640_p1 = scmp.lt.s32.totalorder %s638_s18, %s632_s21 }
  0x32   : > { %p635_p13 = pneg %p634_p11  ;;  %p641_p2 = por %p640_p1, %p639_p0 }
  0x34   : > { %p642_p3 = pnand %p641_p2, %p635_p13 }
  0xee   : > { %v339_v8 = vpop.f32.mrf.mxu0 }
  0xef   : > { %v340_v9 = vadd.f32 %v506_v7, %v339_v8 }
  0xf0   : > { %v528_v10 = vpop.f32.mrf.mxu0 }
  0xf1   : > { %346 = vmax.xlane.f32.xlu0 %v340_v9 }
 0x107   : > { %354 = vperm.xlu0 %600, %v343_v11  }
 0x17a   : > { %v347_v12 = vpop.xlane.xlu0 %346 }
 0x17b   : > { %v348_v13 = vsub.f32 %v340_v9, %v347_v12 }
 0x17d   : > { %v349_v14 = vmul.f32 1.442695, %v348_v13 }
 0x17f   : > { %602 = vpow2.f32 %v349_v14 }
 0x182   : > { %v355_v17 = vpop.permute.xlu0 %354 }
 0x183   : > { %vm356_vm3 = vcmp.eq.s32.totalorder %v345_v16, %v355_v17 }
 0x184   : > { %v357_v19 = vsel %vm356_vm3, %v348_v13, 0.0 }
 0x18c   : > { %v603_v18 = vpop.eup %602 }
 0x18d   : > { %351 = vadd.xlane.f32.xlu1 %v603_v18 }
 0x191   : > { %358 = vadd.xlane.f32.xlu1 %v357_v19 }
 0x216   : > { %v352_v20 = vpop.xlane.xlu1 %351 }
 0x217   : > { %604 = vlog2.f32 %v352_v20 }
 0x21a   : > { %v359_v23 = vpop.xlane.xlu1 %358 }
 0x224   : > { %v605_v21 = vpop.eup %604 }
 0x225   : > { %v361_v22 = vmul.f32 0.6931472, %v605_v21 }
 0x227   : > { %v362_v24 = vsub.f32 %v361_v22, %v359_v23 }
 0x229   : > { %v364_v25 = vsel %vm363_vm4, %v362_v24, 0.0 }
 0x22a   : > { %v367_v26 = vsel %vm366_vm5, %v364_v25, 0.0 }
 0x22b   : > { %v368_v27 = vrot.slane %v367_v26, 4 }
 0x22d   : > { %v369_v28 = vadd.f32 %v368_v27, %v367_v26 }
 0x22f   : > { %v370_v29 = vrot.slane %v369_v28, 2 }
 0x231   : > { %v371_v30 = vadd.f32 %v370_v29, %v369_v28 }
 0x233   : > { %v372_v31 = vrot.slane %v371_v30, 1 }
 0x235   : > { %v373_v33 = vadd.f32 %v372_v31, %v371_v30 }
 0x237   : > { %v374_v34 = vadd.f32 %v373_v33, %v365_v32 }
 0x239   : > { %376 = vst.msk [vmem:[#allocation2] sm:$0x1] %vm255_vm0, %v374_v34 }
 0x240   : > { %v508_v35 = vld [vmem:[#allocation2] ss:$0 sm:$0xff] }
 0x241   : > { %387 = vperm.xlu1 %601, %v508_v35  }
 0x2bc   : > { %v388_v36 = vpop.permute.xlu1 %387 }
 0x2bd   : > { %390 = vst [vmem:[%s238_s8] sm:$0xff] %v388_v36 }
 0x2be   : > { %645 = shalt.err (!%p642_p3)
}
 0x2bf   : > { %s646_s26 = scalar_lea.hbm %s403_s13, 128  ;;  %s650_s5 = scalar_lea.hbm %s884_s4, 256 }
 0x2c0   : > { %p647_p5 = scmp.ne.s32.totalorder %s403_s13, %s646_s26  ;;  %p651_p9 = scmp.lt.s32.totalorder %s403_s13, %s884_s4 }
 0x2c1   : > { %p652_p12 = scmp.lt.s32.totalorder %s650_s5, %s646_s26 }
 0x2c2   : > { %p648_p6 = pnand %p647_p5, %p786_p4 }
 0x2c3   : > { %p653_p10 = por %p652_p12, %p651_p9 }
 0x2c4   : > { %p649_p7 = pneg %p648_p6 }
 0x2c6   : > { %p654_p11 = pnand %p653_p10, %p649_p7 }
 0x2c8   : > { %657 = shalt.err (!%p654_p11)
}
 0x2c9   : > { %533 = dma.vmem_to_hbm [thread:$0]  (%p786_p4), %s837_s9, 128, %s403_s13, %s392_s14  }
 0x2ca PF: > { %p545_p13 = scmp.ge.s32.totalorder %s712_s20, 2  ;;  %s417_s8 = sand.u32 1, %s692_s15  }
 0x2cb   : > { %s418_s10 = scalar_lea.sflag [#allocation5], %s417_s8 }
 0x2cc   : > { %p540_p0 = pnand %p545_p13, %p793_p8 }
 0x2ce   : > { %p541_p1 = pneg %p540_p0 }
 0x2d0   : > { %687 = dma.done.wait (%p541_p1), %s418_s10, 128  }
 0x2d1   : > { %689 = vsyncadd (%p541_p1), %s418_s10, 4294967168  ;;  %s18_s20 = sadd.s32 1, %s712_s20   ;;  %s889_s15 = smov %s696_s16 }
 0x2d2   : > { %p15_p2 = scmp.ge.s32.totalorder %s18_s20, 4   ;;  %s890_s16 = smov %s700_s17 }
 0x2d3   : > { %s891_s17 = smov %s799_s28  ;;  %s892_s18 = smov %s708_s19 }
 0x2d4   : > { %s893_s19 = smov %s895_s23  ;;  %17 = sbr.rel (!%p15_p2) target bundleno = 5 (0x5), region = 87 }
 0x2d9   :  { %423 = vsyncpa [#allocation4], 1 }
 0x2da   :  { %425 = vsyncpa [#allocation4 + $0x1], 1 }
 0x2db   :  { %426 = vsyncpa [#allocation5], 1 }
 0x2dc   :  { %428 = vsyncpa [#allocation5 + $0x1], 1 }

</bundles_post_ra>
